<compile_context>
chip_gen: v7x
topology: tpu7x:2x2x1
jax: 0.10.0
libtpu: 0.0.40
codegen_flags: <defaults>
</compile_context>

<pallas_src>
import functools

import jax
import jax.numpy as jnp
from jax.experimental import pallas as pl
from jax.experimental.pallas import tpu as pltpu


def conv1d_tanh_kernel(x_ref, w_ref, o_ref, *, K):
    """x_ref: (1, C_pad, L_pad) VMEM  - input row replicated on the sublanes, lane zero-padded
       w_ref: (C_pad, 128)     VMEM  - w_ref[c, k] = weight[c, k] for c < C_out, k < K, else 0
       o_ref: (1, C_pad, Lo)   VMEM  - rows = output channels, lane-dense (Lo = 128-multiple)."""
    x = x_ref[0]                        # (C_pad, L_pad), loaded once
    n = o_ref.shape[-1]                 # lane-dense output width (128)
    # k = 0 tap initializes the accumulator (no jnp.zeros init needed).
    acc = w_ref[:, 0:1] * x[:, 0:n]
    for k in range(1, K):               # K = 3, fully unrolled
        # (C_pad, 1) weight column broadcast-multiplied against the k-shifted
        # input view; each shifted view is built exactly once (XLU shift).
        acc = acc + w_ref[:, k:k + 1] * x[:, k:k + n]
    o_ref[0] = jnp.tanh(acc)            # one EUP tanh + one unmasked vreg store


def conv1d_tanh(x, w):
    """x: (B, 1, L) float32, w: (C_out, 1, K) float32 -> (B, C_out, L - K + 1)."""
    B, C_in, L = x.shape
    assert C_in == 1
    C_out, _, K = w.shape
    L_out = L - K + 1

    # Sublane / lane aligned padded sizes.
    C_pad = ((C_out + 7) // 8) * 8               # 6  -> 8   sublanes
    L_out_pad = ((L_out + 127) // 128) * 128     # 126 -> 128 lanes
    L_pad = L_out_pad + K - 1                    # 130 input lanes needed

    # Input: squeeze the single channel, zero-pad the lane dim, replicate the
    # row across C_pad sublanes so every output channel reads the same data
    # (tiny: B * C_pad * L_pad f32).
    x2d = x.reshape(B, L).astype(jnp.float32)
    x2d = jnp.pad(x2d, ((0, 0), (0, L_pad - L)))
    x_b = jnp.broadcast_to(x2d[:, None, :], (B, C_pad, L_pad))

    # Weights: (C_out, K) zero-padded into a single (C_pad, 128) VMEM tile.
    w2d = w.reshape(C_out, K).astype(jnp.float32)
    w_pad = jnp.pad(w2d, ((0, C_pad - C_out), (0, 128 - K)))

    out_pad = pl.pallas_call(
        functools.partial(conv1d_tanh_kernel, K=K),
        out_shape=jax.ShapeDtypeStruct((B, C_pad, L_out_pad), jnp.float32),
        grid_spec=pltpu.PrefetchScalarGridSpec(
            num_scalar_prefetch=0,
            grid=(B,),
            in_specs=[
                pl.BlockSpec((1, C_pad, L_pad), lambda b: (b, 0, 0)),   # x
                pl.BlockSpec((C_pad, 128), lambda b: (0, 0)),           # w (resident)
            ],
            out_specs=pl.BlockSpec((1, C_pad, L_out_pad), lambda b: (b, 0, 0)),
        ),
        compiler_params=pltpu.CompilerParams(
            dimension_semantics=("parallel",)),
    )(x_b, w_pad)

    # Already in (B, C, L) order: just drop the pad rows / lanes (no transpose).
    return out_pad[:, :C_out, :L_out]


if __name__ == "__main__":
    key = jax.random.PRNGKey(0)
    kx, kw = jax.random.split(key)

    # Shapes implied by the module: x = randn(1, 1, 128), Conv1d(1, 6, k=3, no bias)
    B, C_in, L = 1, 1, 128
    C_out, K = 6, 3

    x = jax.random.normal(kx, (B, C_in, L), dtype=jnp.float32)
    # Deterministic weight init (Conv1d-style uniform bound 1/sqrt(C_in*K))
    bound = 1.0 / jnp.sqrt(jnp.float32(C_in * K))
    w = jax.random.uniform(kw, (C_out, C_in, K), dtype=jnp.float32,
                           minval=-bound, maxval=bound)

    out = conv1d_tanh(x, w)
    out = jax.block_until_ready(out)

    # Pure-JAX reference (valid conv == PyTorch cross-correlation, then tanh)
    ref = jax.lax.conv_general_dilated(
        x, w, window_strides=(1,), padding="VALID",
        dimension_numbers=("NCH", "OIH", "NCH"))
    ref = jnp.tanh(ref)

    assert out.shape == (B, C_out, L - K + 1), out.shape
    assert jnp.allclose(out, ref, atol=1e-5, rtol=1e-5), "mismatch vs reference"

    print("KERNEL_OK")
</pallas_src>

<mosaic_0001>
module attributes {stable_mosaic.version = 11 : i64} {
  func.func @conv1d_tanh_kernel(%arg0: i32, %arg1: memref<1x8x130xf32, #tpu.memory_space<vmem>>, %arg2: memref<8x128xf32, #tpu.memory_space<vmem>>, %arg3: memref<1x8x128xf32, #tpu.memory_space<vmem>>) attributes {dimension_semantics = [#tpu.dimension_semantics<parallel>], iteration_bounds = array<i64: 1>, scalar_prefetch = 0 : i64, scratch_operands = 0 : i64, tpu.core_type = #tpu.core_type<tc>, window_params = [{transform_indices = @transform_0, window_bounds = array<i64: 1, 8, 130>}, {pipeline_mode = #tpu.pipeline_mode<synchronous>, transform_indices = @transform_1, window_bounds = array<i64: 8, 128>}, {transform_indices = @transform_2, window_bounds = array<i64: 1, 8, 128>}]} {
    %c0 = arith.constant 0 : index
    %c0_0 = arith.constant 0 : index
    %c0_1 = arith.constant 0 : index
    %0 = vector.load %arg1[%c0, %c0_0, %c0_1] : memref<1x8x130xf32, #tpu.memory_space<vmem>>, vector<1x8x130xf32>
    %1 = vector.shape_cast %0 : vector<1x8x130xf32> to vector<8x130xf32>
    %c0_2 = arith.constant 0 : index
    %c0_3 = arith.constant 0 : index
    %2 = vector.load %arg2[%c0_2, %c0_3] : memref<8x128xf32, #tpu.memory_space<vmem>>, vector<8x1xf32>
    %3 = vector.extract_strided_slice %1 {offsets = [0, 0], sizes = [8, 128], strides = [1, 1]} : vector<8x130xf32> to vector<8x128xf32>
    %4 = vector.broadcast %2 : vector<8x1xf32> to vector<8x128xf32>
    %5 = arith.mulf %4, %3 : vector<8x128xf32>
    %c0_4 = arith.constant 0 : index
    %c1 = arith.constant 1 : index
    %6 = vector.load %arg2[%c0_4, %c1] : memref<8x128xf32, #tpu.memory_space<vmem>>, vector<8x1xf32>
    %7 = vector.extract_strided_slice %1 {offsets = [0, 1], sizes = [8, 128], strides = [1, 1]} : vector<8x130xf32> to vector<8x128xf32>
    %8 = vector.broadcast %6 : vector<8x1xf32> to vector<8x128xf32>
    %9 = arith.mulf %8, %7 : vector<8x128xf32>
    %10 = arith.addf %5, %9 : vector<8x128xf32>
    %c0_5 = arith.constant 0 : index
    %c2 = arith.constant 2 : index
    %11 = vector.load %arg2[%c0_5, %c2] : memref<8x128xf32, #tpu.memory_space<vmem>>, vector<8x1xf32>
    %12 = vector.extract_strided_slice %1 {offsets = [0, 2], sizes = [8, 128], strides = [1, 1]} : vector<8x130xf32> to vector<8x128xf32>
    %13 = vector.broadcast %11 : vector<8x1xf32> to vector<8x128xf32>
    %14 = arith.mulf %13, %12 : vector<8x128xf32>
    %15 = arith.addf %10, %14 : vector<8x128xf32>
    %16 = math.tanh %15 : vector<8x128xf32>
    %c0_6 = arith.constant 0 : index
    %c0_7 = arith.constant 0 : index
    %c0_8 = arith.constant 0 : index
    %17 = vector.load %arg3[%c0_6, %c0_7, %c0_8] : memref<1x8x128xf32, #tpu.memory_space<vmem>>, vector<1x8x128xf32>
    %18 = vector.shape_cast %17 : vector<1x8x128xf32> to vector<8x128xf32>
    %19 = vector.shape_cast %16 : vector<8x128xf32> to vector<1x8x128xf32>
    tpu.vector_store %arg3[%c0_6, %c0_7, %c0_8], %19 {strides = array<i32>} : memref<1x8x128xf32, #tpu.memory_space<vmem>>, vector<1x8x128xf32>,
    return
  }
  func.func @transform_0(%arg0: i32) -> (i32, i32, i32) {
    %c0_i32 = arith.constant 0 : i32
    %c0_i32_0 = arith.constant 0 : i32
    %c0_i32_1 = arith.constant 0 : i32
    return %arg0, %c0_i32, %c0_i32_0 : i32, i32, i32
  }
  func.func @transform_1(%arg0: i32) -> (i32, i32) {
    %c0_i32 = arith.constant 0 : i32
    %c0_i32_0 = arith.constant 0 : i32
    %c0_i32_1 = arith.constant 0 : i32
    return %c0_i32, %c0_i32_0 : i32, i32
  }
  func.func @transform_2(%arg0: i32) -> (i32, i32, i32) {
    %c0_i32 = arith.constant 0 : i32
    %c0_i32_0 = arith.constant 0 : i32
    %c0_i32_1 = arith.constant 0 : i32
    return %arg0, %c0_i32, %c0_i32_0 : i32, i32, i32
  }
}

</mosaic_0001>

<bundles_post_ra>
// kernel: tpu_custom_call.1
= control target key start
LH: loop header
LB: loop body
LE: loop exit
PB: predicated region body
PF: predicated region fallthrough
CT: control target
= control target key end

     0   :  { %7 = vsyncpa [#allocation3], 0  ;;  %s239_s0 = inlined_call_operand.hbm [shape: f32[1,8,130], index: 0, kind: input, shape index: {}]   ;;  %s240_s1 = inlined_call_operand.hbm [shape: f32[8,128], index: 1, kind: input, shape index: {}]   ;;  %s241_s2 = inlined_call_operand.hbm [shape: f32[1,8,128], index: 2, kind: output, shape index: {}]  }
   0x1   :  { %8 = vsyncpa [#allocation6], 0 }
   0x2   :  { %9 = vsyncpa [#allocation4], 0  ;;  %s180_s9 = smov [#allocation2]   ;;  %s181_s11 = smov [#allocation5]  }
   0x3   :  { %s16_s10 = sshll.u32 %s180_s9, 4  ;;  %s26_s12 = sshll.u32 %s181_s11, 4  ;;  %s17_s10 = int_to_ptr.vmem [resolvable:$true] %s16_s10  ;;  %s27_s12 = int_to_ptr.vmem [resolvable:$true] %s26_s12 }
   0x4   :  { %s108_s15 = scalar_lea.hbm %s239_s0, 256 }
   0x5   :  { %p109_p0 = scmp.ne.s32.totalorder %s239_s0, %s108_s15  ;;  %p112_p1 = scmp.lt.u32.totalorder %s108_s15, %s239_s0 }
   0x7   :  { %p114_p2 = pnand %p112_p1, %p109_p0 }
   0x9   :  { %117 = shalt.err (!%p114_p2)
}
   0xa   :  { %s118_s20 = scalar_lea.vmem %s17_s10, 256  ;;  %p123_p4 = scmp.lt.s32.totalorder %s17_s10, %s17_s10 }
   0xb   :  { %p119_p3 = scmp.ne.s32.totalorder %s17_s10, %s118_s20  ;;  %p124_p5 = scmp.lt.s32.totalorder %s118_s20, %s118_s20 }
   0xd   :  { %p125_p6 = por %p124_p5, %p123_p4 }
   0xf   :  { %p126_p7 = pnand %p125_p6, %p119_p3 }
  0x11   :  { %129 = shalt.err (!%p126_p7)
}
  0x12   :  { %19 = dma.hbm_to_vmem [thread:$0]  %s239_s0, 256, %s17_s10, [#allocation3]  }
  0x13   :  { %s130_s25 = scalar_lea.hbm %s240_s1, 128 }
  0x14   :  { %p131_p8 = scmp.ne.s32.totalorder %s240_s1, %s130_s25  ;;  %p134_p9 = scmp.lt.u32.totalorder %s130_s25, %s240_s1 }
  0x16   :  { %p136_p10 = pnand %p134_p9, %p131_p8 }
  0x18   :  { %139 = shalt.err (!%p136_p10)
}
  0x19   :  { %s140_s30 = scalar_lea.vmem %s27_s12, 128  ;;  %p145_p12 = scmp.lt.s32.totalorder %s27_s12, %s27_s12 }
  0x1a   :  { %p141_p11 = scmp.ne.s32.totalorder %s27_s12, %s140_s30  ;;  %p146_p13 = scmp.lt.s32.totalorder %s140_s30, %s140_s30 }
  0x1c   :  { %p147_p0 = por %p146_p13, %p145_p12 }
  0x1e   :  { %p148_p1 = pnand %p147_p0, %p141_p11 }
  0x20   :  { %151 = shalt.err (!%p148_p1)
}
  0x21   :  { %29 = dma.hbm_to_vmem [thread:$0]  %s240_s1, 128, %s27_s12, [#allocation6]  }
  0x22   :  { %174 = dma.done.wait [#allocation3], 256  }
  0x23   :  { %175 = vsyncadd [#allocation3], 4294967040 }
  0x24   :  { %176 = dma.done.wait [#allocation6], 128  }
  0x25   :  { %177 = vsyncadd [#allocation6], 4294967168  ;;  %v182_v0 = vmov 1   ;;  %v183_v1 = vmov 0   ;;  %v38_v2 = vld [vmem:[#allocation5] sm:$0xff]  ;;  %v184_v3 = vmov 2  }
  0x26   :  { %103 = vset.pattern.permute.xlu0 %v182_v0  ;;  %105 = vset.pattern.permute.xlu1 %v183_v1  ;;  %v36_v4 = vld [vmem:[#allocation2] sm:$0xff]  ;;  %v37_v7 = vld [vmem:[#allocation2 + $0x8] sm:$0xff]  ;;  %s185_s4 = smov 127   ;;  %s186_s1 = smov 126   ;;  %vm57_vm0 = vcmask 1039360   ;;  %vm73_vm1 = vcmask 1031168  }
  0x27   :  { %46 = vperm.xlu0 %103, %v38_v2   ;;  %41 = vperm.xlu1 %105, %v38_v2   ;;  %s187_s5 = smov [#allocation7]  }
  0x28   :  { %s85_s6 = sshll.u32 %s187_s5, 4  ;;  %s86_s6 = int_to_ptr.vmem [resolvable:$true] %s85_s6 }
  0x29   :  { %s152_s7 = scalar_lea.vmem %s86_s6, 128  ;;  %p157_p3 = scmp.lt.s32.totalorder %s86_s6, %s86_s6 }
  0x2a   :  { %p153_p2 = scmp.ne.s32.totalorder %s86_s6, %s152_s7  ;;  %p158_p4 = scmp.lt.s32.totalorder %s152_s7, %s152_s7 }
  0x2b   :  { %104 = vset.pattern.permute.xlu0 %v184_v3 }
  0x2c   :  { %62 = vperm.xlu0 %104, %v38_v2   ;;  %p159_p5 = por %p158_p4, %p157_p3 }
  0x2e   :  { %p160_p6 = pnand %p159_p5, %p153_p2 }
  0xa6   :  { %v47_v5 = vpop.permute.xlu0 %46  ;;  %v42_v12 = vpop.permute.xlu1 %41 }
  0xa7   :  { %v49_v6 = vmul.f32 %v47_v5, %v36_v4  ;;  %v50_v8 = vmul.f32 %v47_v5, %v37_v7  ;;  %v44_v16 = vmul.f32 %v42_v12, %v36_v4 }
  0xa9   :  { %53 = vrot.lane.b32.xlu1 %v49_v6, %s185_s4 }
  0xab   :  { %v63_v9 = vpop.permute.xlu0 %62 }
  0xac   :  { %v65_v10 = vmul.f32 %v63_v9, %v36_v4  ;;  %v66_v11 = vmul.f32 %v63_v9, %v37_v7 }
  0xad   :  { %55 = vrot.lane.b32.xlu1 %v50_v8, %s185_s4 }
  0xae   :  { %69 = vrot.lane.b32.xlu0 %v65_v10, %s186_s1 }
  0xb1   :  { %71 = vrot.lane.b32.xlu1 %v66_v11, %s186_s1 }
 0x11b   :  { %v54_v13 = vpop.permute.xlu1 %53 }
 0x11f   :  { %v56_v14 = vpop.permute.xlu1 %55 }
 0x120   :  { %v58_v15 = vsel %vm57_vm0, %v54_v13, %v56_v14  ;;  %v70_v17 = vpop.permute.xlu0 %69 }
 0x121   :  { %v60_v18 = vadd.f32 %v58_v15, %v44_v16 }
 0x123   :  { %v72_v19 = vpop.permute.xlu1 %71 }
 0x124   :  { %v74_v20 = vsel %vm73_vm1, %v70_v17, %v72_v19 }
 0x125   :  { %v76_v21 = vadd.f32 %v74_v20, %v60_v18 }
 0x127   :  { %106 = vtanh.f32 %v76_v21 }
 0x131   :  { %v107_v22 = vpop.eup %106 }
 0x132   :  { %78 = vst [vmem:[#allocation7] sm:$0xff] %v107_v22 }
 0x133   :  { %163 = shalt.err (!%p160_p6)
}
 0x134   :  { %s164_s10 = scalar_lea.hbm %s241_s2, 128 }
 0x135   :  { %p165_p7 = scmp.ne.s32.totalorder %s241_s2, %s164_s10  ;;  %p168_p8 = scmp.lt.u32.totalorder %s164_s10, %s241_s2 }
 0x137   :  { %p170_p9 = pnand %p168_p8, %p165_p7 }
 0x139   :  { %173 = shalt.err (!%p170_p9)
}
 0x13a   :  { %88 = dma.vmem_to_hbm [thread:$0]  %s86_s6, 128, %s241_s2, [#allocation4]  }
 0x13b   :  { %178 = dma.done.wait [#allocation4], 128  }
 0x13c   :  { %179 = vsyncadd [#allocation4], 4294967168 }
 0x13d   :  { %92 = vsyncpa [#allocation3], 1 }
 0x13e   :  { %93 = vsyncpa [#allocation6], 1 }
 0x13f   :  { %94 = vsyncpa [#allocation4], 1 }

</bundles_post_ra>
